<compile_context>
chip_gen: v5e
topology: v5e:2x2
jax: 0.10.0
libtpu: 0.0.40
codegen_flags: <defaults>
</compile_context>

<pallas_src>
import math

import jax
import jax.numpy as jnp
from jax import lax
from jax.experimental import pallas as pl
from jax.experimental.pallas import tpu as pltpu

# ---- model sizes (small, consistent with the module's semantics) ----
D = 8      # number of nodes in the SCM
N = 128    # n_data_samples
S = 8      # n_joint_dist_samples
SD = S * D
DD = D * D
assert (D & (D - 1)) == 0 and D >= 2, "NOTEARS repeated squaring assumes D is a power of two"
_LOG2_D = D.bit_length() - 1

# ---- fixed distribution hyper-parameters (deterministic, in-script) ----
SIGMA_OBS = 0.5      # observation noise of the conditional data distribution
PRIOR_EDGE_P = 0.3   # Bernoulli prior probability of an edge
PRIOR_W_STD = 1.0    # Gaussian prior std of structural-equation weights
_LOG_2PI = math.log(2.0 * math.pi)

# ---- packed-input row offsets (all 8-aligned sublane offsets) ----
_M0_OFF = 0            # rows [0, SD)              NOTEARS m0 = I + blockdiag(adj)/D
_ADJ_OFF = SD          # rows [SD, SD+S)           adj flattened per sample
_W_OFF = SD + S        # rows [SD+S, SD+2S)        weights flattened per sample
_Q_OFF = SD + 2 * S    # rows [SD+2S, SD+3S)       [q_probs, q_mu, q_logstd, zero pad...]
_PACK_ROWS = SD + 3 * S


def _vscm_kernel(scalars_ref, data_t_ref, stacks_ref, pack_ref, out_ref):
    """Single invocation (grid=()), everything resident in VMEM.

    scalars_ref : SMEM (2,)            [gibbs_temp, sparsity_factor]
    data_t_ref  : (D, N)               data samples transposed (lane-dense, one f32 vreg)
    stacks_ref  : (2*S*D, D)           rows [0,SD): adj[s].T stacked; rows [SD,2SD): w[s].T stacked
    pack_ref    : (_PACK_ROWS, D*D)    [m0 | adj_flat | w_flat | q_probs,q_mu,q_logstd,pad]
    out_ref     : (S, 3)               columns: data_ll, kl, var_log_prob
    """
    gibbs_temp = scalars_ref[0]
    sparsity_factor = scalars_ref[1]

    data_t = data_t_ref[...]                           # (D, N)
    adj_s = stacks_ref[pl.ds(0, SD), :]                # (SD, D)  adj[s].T stacked along rows
    w_s = stacks_ref[pl.ds(SD, SD), :]                 # (SD, D)  w[s].T stacked along rows
    m0 = pack_ref[pl.ds(_M0_OFF, SD), :]               # (SD, SD) block-diag NOTEARS base matrix
    adj_flat = pack_ref[pl.ds(_ADJ_OFF, S), :]         # (S, DD)
    w_flat = pack_ref[pl.ds(_W_OFF, S), :]             # (S, DD)
    q_blk = pack_ref[pl.ds(_Q_OFF, S), :]              # (S, DD), only rows 0..2 meaningful
    qp = q_blk[0:1]                                    # (1, DD)
    qmu = q_blk[1:2]
    qlogstd = q_blk[2:3]

    # ---- data_dist.log_prob: residual folded into one stacked MXU matmul ----
    # resid[s]^T = (I - (adj[s]*w[s])^T) @ X^T ; stacked over samples: (SD, D) @ (D, N)
    r = lax.broadcasted_iota(jnp.int32, (SD, D), 0)
    c = lax.broadcasted_iota(jnp.int32, (SD, D), 1)
    ident_stack = ((r & (D - 1)) == c).astype(jnp.float32)         # stacked D x D identities
    resid_mat = ident_stack - adj_s * w_s                          # (SD, D)
    resid = jnp.dot(resid_mat, data_t, preferred_element_type=jnp.float32)   # (SD, N)
    rsq = resid * resid
    ss = jnp.sum(jnp.sum(rsq.reshape(S, D, N), axis=2), axis=1, keepdims=True)   # (S, 1)
    dll = ((-0.5 / (SIGMA_OBS * SIGMA_OBS)) * ss
           - float(N * D) * (0.5 * _LOG_2PI + math.log(SIGMA_OBS)))

    # ---- NOTEARS acyclicity penalty h(A) = tr((I + A/D)^D) - D, all S samples at once ----
    # m0 is block-diagonal (built in the wrapper). Square log2(D)-1 times, then get the trace of
    # the final doubling via row-sums of m4 * m4^T (off-block products vanish by block-diagonality)
    # -> one fewer f32 MXU matmul and no diagonal mask.
    m = m0
    for _ in range(_LOG2_D - 1):
        m = jnp.dot(m, m, preferred_element_type=jnp.float32)
    prod = m * m.T                                                  # (SD, SD)
    trace_s = jnp.sum(jnp.sum(prod.reshape(S, D, SD), axis=2), axis=1, keepdims=True)
    h = trace_s - float(D)                                          # (S, 1)

    # ---- variational + prior log-probs: all lane reductions fused into one ----
    # TODO(synk): clamp qp away from exactly 0/1 if training can saturate the sigmoid (same
    # behavior as the reference today, so left unclamped to match it bit-for-bit).
    log_qp = jnp.log(qp)                       # issued once (single kernel invocation)
    log_1mqp = jnp.log(1.0 - qp)
    inv_var_q = jnp.exp(-2.0 * qlogstd)        # 1/std^2, one EUP pass; log(std) == qlogstd
    dwq = w_flat - qmu
    stacked = jnp.concatenate([
        adj_flat * (log_qp - log_1mqp),        # rows [0, S)      -> bern_q data term
        dwq * dwq * inv_var_q,                 # rows [S, 2S)     -> norm_q quadratic
        adj_flat,                              # rows [2S, 3S)    -> sum(adj) (prior + sparsity)
        w_flat * w_flat,                       # rows [3S, 4S)    -> norm_p quadratic
        log_1mqp,                              # row 4S           -> sum(log(1-qp))
        qlogstd,                               # row 4S+1         -> sum(qlogstd)
    ], axis=0)                                 # (4S+2, DD)
    red = jnp.sum(stacked, axis=1, keepdims=True)                   # (4S+2, 1), single XLU pass

    bern_q = red[0:S] + red[4 * S:4 * S + 1]
    norm_q = (-0.5 * red[S:2 * S] - red[4 * S + 1:4 * S + 2]
              - 0.5 * float(DD) * _LOG_2PI)
    sum_adj = red[2 * S:3 * S]
    var_lp = bern_q + norm_q                                        # (S, 1)

    bern_p = (sum_adj * (math.log(PRIOR_EDGE_P) - math.log(1.0 - PRIOR_EDGE_P))
              + float(DD) * math.log(1.0 - PRIOR_EDGE_P))
    norm_p = ((-0.5 / (PRIOR_W_STD * PRIOR_W_STD)) * red[3 * S:4 * S]
              - float(DD) * (math.log(PRIOR_W_STD) + 0.5 * _LOG_2PI))
    prior_lp = bern_p + norm_p - gibbs_temp * h - sparsity_factor * sum_adj

    # single merged output store: columns = [data_ll, kl, var_log_prob]
    out_ref[...] = jnp.concatenate([dll, var_lp - prior_lp, var_lp], axis=1)


@jax.jit
def vscm_pallas(data, adj_samples, weight_samples, q_probs, q_mu, q_logstd,
                gibbs_temp, sparsity_factor):
    """Layout plumbing (transposes/reshapes/packing) + one fused Pallas kernel call."""
    data_t = data.T                                                  # (D, N) lane-dense
    adj_stack = jnp.transpose(adj_samples, (0, 2, 1)).reshape(SD, D)
    w_stack = jnp.transpose(weight_samples, (0, 2, 1)).reshape(SD, D)
    stacks = jnp.concatenate([adj_stack, w_stack], axis=0)           # (2*SD, D), one window

    # NOTEARS base matrix m0 = I + blockdiag(adj_s)/D  (trace is transpose-invariant, so the
    # untransposed blocks are fine) -- built here as layout plumbing, shipped in the packed slab.
    eye_s = jnp.eye(S, dtype=jnp.float32)
    blockdiag = jnp.einsum('sij,st->sitj', adj_samples, eye_s).reshape(SD, SD)
    m0 = jnp.eye(SD, dtype=jnp.float32) + blockdiag * (1.0 / float(D))

    pack64 = jnp.concatenate([
        m0,                                                          # rows [0, SD)
        adj_samples.reshape(S, DD),                                  # rows [SD, SD+S)
        weight_samples.reshape(S, DD),                               # rows [SD+S, SD+2S)
        q_probs.reshape(1, DD),
        q_mu.reshape(1, DD),
        q_logstd.reshape(1, DD),
        jnp.zeros((S - 3, DD), jnp.float32),                         # pad to 8-row alignment
    ], axis=0)                                                       # (_PACK_ROWS, DD)

    # runtime scalars in SMEM -> changing gibbs_temp each epoch does NOT recompile
    scalars = jnp.stack([jnp.asarray(gibbs_temp, dtype=jnp.float32),
                         jnp.asarray(sparsity_factor, dtype=jnp.float32)])

    vmem = pl.BlockSpec(memory_space=pltpu.MemorySpace.VMEM)
    smem = pl.BlockSpec(memory_space=pltpu.MemorySpace.SMEM)

    out = pl.pallas_call(
        _vscm_kernel,
        out_shape=jax.ShapeDtypeStruct((S, 3), jnp.float32),
        in_specs=[smem, vmem, vmem, vmem],
        out_specs=vmem,
    )(scalars, data_t, stacks, pack64)
    return out[:, 0], out[:, 1], out[:, 2]


def vscm_reference(data, adj, w, qp, qmu, qlogstd, gibbs_temp, sparsity_factor):
    """Pure-JAX reference for correctness checking."""
    qstd = jnp.exp(qlogstd)
    w_eff = adj * w
    pred = jnp.einsum('nd,sde->sne', data, w_eff)
    resid = data[None] - pred
    dll = (-0.5 * jnp.sum(resid ** 2, axis=(1, 2)) / (SIGMA_OBS ** 2)
           - data.size * (0.5 * _LOG_2PI + math.log(SIGMA_OBS)))
    bern_q = jnp.sum(adj * jnp.log(qp) + (1 - adj) * jnp.log(1 - qp), axis=(1, 2))
    norm_q = jnp.sum(-0.5 * ((w - qmu) / qstd) ** 2 - jnp.log(qstd) - 0.5 * _LOG_2PI,
                     axis=(1, 2))
    var_lp = bern_q + norm_q
    bern_p = jnp.sum(adj * math.log(PRIOR_EDGE_P)
                     + (1 - adj) * math.log(1.0 - PRIOR_EDGE_P), axis=(1, 2))
    norm_p = jnp.sum(-0.5 * (w / PRIOR_W_STD) ** 2
                     - math.log(PRIOR_W_STD) - 0.5 * _LOG_2PI, axis=(1, 2))
    eye = jnp.eye(D, dtype=jnp.float32)
    m = eye[None] + adj / float(D)
    for _ in range(_LOG2_D):                       # (I + A/D)^D via repeated squaring
        m = jnp.einsum('sij,sjk->sik', m, m)
    h = jnp.trace(m, axis1=1, axis2=2) - float(D)
    prior_lp = (bern_p + norm_p - gibbs_temp * h
                - sparsity_factor * jnp.sum(adj, axis=(1, 2)))
    return dll, var_lp - prior_lp, var_lp


class VSCM:
    """Mirror of the PyTorch VSCM orchestration (hot path runs in the Pallas kernel)."""

    def __init__(self, true_w, q_probs, q_mu, q_logstd,
                 gibbs_temp=10.0, sparsity_factor=0.0, gibbs_update=None):
        self.true_w = true_w
        self.q_probs = q_probs
        self.q_mu = q_mu
        self.q_logstd = q_logstd
        self.gibbs_temp = gibbs_temp
        self.sparsity_factor = sparsity_factor
        self.gibbs_update = gibbs_update

    def _update_gibbs_temp(self, e):
        if self.gibbs_update is not None:
            return self.gibbs_update(self.gibbs_temp, e)
        return self.gibbs_temp

    def _scm_sample(self, key, n):
        # ancestral sampling of the linear-Gaussian SCM: X = E (I - W_true)^{-1}
        noise = jax.random.normal(key, (n, D), dtype=jnp.float32)
        return noise @ jnp.linalg.inv(jnp.eye(D, dtype=jnp.float32) - self.true_w)

    def _var_joint_sample(self, key, n):
        k1, k2 = jax.random.split(key)
        u = jax.random.uniform(k1, (n, D, D), dtype=jnp.float32)
        adj = (u < self.q_probs[None]).astype(jnp.float32)
        eps = jax.random.normal(k2, (n, D, D), dtype=jnp.float32)
        w = self.q_mu[None] + jnp.exp(self.q_logstd)[None] * eps
        return adj, w

    def forward(self, key, n_data_samples, n_joint_dist_samples, e):
        kd, kq = jax.random.split(key)
        data_samples = self._scm_sample(kd, n_data_samples)
        adj_samples, weight_samples = self._var_joint_sample(kq, n_joint_dist_samples)
        self.gibbs_temp = self._update_gibbs_temp(e)
        data_likelihood, kl, var_log_probs = vscm_pallas(
            data_samples, adj_samples, weight_samples,
            self.q_probs, self.q_mu, self.q_logstd,
            self.gibbs_temp, self.sparsity_factor)
        return (data_likelihood, kl, var_log_probs), \
               (data_samples, adj_samples, weight_samples)


if __name__ == "__main__":
    key = jax.random.PRNGKey(0)
    k_true, k_logit, k_mu, k_fwd = jax.random.split(key, 4)

    # deterministic "ground truth" SCM: strictly upper-triangular weights (a DAG)
    true_w = jnp.triu(0.5 * jax.random.normal(k_true, (D, D), dtype=jnp.float32), k=1)

    # deterministic variational parameters
    q_logits = 0.5 * jax.random.normal(k_logit, (D, D), dtype=jnp.float32)
    q_probs = jax.nn.sigmoid(q_logits)
    q_mu = 0.1 * jax.random.normal(k_mu, (D, D), dtype=jnp.float32)
    q_logstd = jnp.full((D, D), -1.0, dtype=jnp.float32)

    model = VSCM(true_w, q_probs, q_mu, q_logstd,
                 gibbs_temp=10.0, sparsity_factor=0.1,
                 gibbs_update=lambda t, e: t * (1.0 + 0.01 * e))

    (data_ll, kl, var_lp), (data, adj, w) = model.forward(
        k_fwd, n_data_samples=N, n_joint_dist_samples=S, e=5)
    jax.block_until_ready((data_ll, kl, var_lp))

    # correctness check against a pure-JAX reference
    ref_dll, ref_kl, ref_var = vscm_reference(
        data, adj, w, q_probs, q_mu, q_logstd,
        model.gibbs_temp, model.sparsity_factor)
    assert jnp.allclose(data_ll, ref_dll, rtol=1e-3, atol=1e-2), (data_ll, ref_dll)
    assert jnp.allclose(kl, ref_kl, rtol=1e-3, atol=1e-2), (kl, ref_kl)
    assert jnp.allclose(var_lp, ref_var, rtol=1e-3, atol=1e-2), (var_lp, ref_var)

    print("KERNEL_OK")
</pallas_src>

<mosaic_0001>
module attributes {stable_mosaic.version = 11 : i64} {
  func.func @_vscm_kernel(%arg0: memref<2xf32, #tpu.memory_space<smem>>, %arg1: memref<8x128xf32, #tpu.memory_space<vmem>>, %arg2: memref<128x8xf32, #tpu.memory_space<vmem>>, %arg3: memref<88x64xf32, #tpu.memory_space<vmem>>, %arg4: memref<8x3xf32, #tpu.memory_space<vmem>>) attributes {dimension_semantics = [], scalar_prefetch = 0 : i64, scratch_operands = 0 : i64, tpu.core_type = #tpu.core_type<tc>} {
    %c0 = arith.constant 0 : index
    %0 = memref.load %arg0[%c0] : memref<2xf32, #tpu.memory_space<smem>>
    %c1 = arith.constant 1 : index
    %1 = memref.load %arg0[%c1] : memref<2xf32, #tpu.memory_space<smem>>
    %c0_0 = arith.constant 0 : index
    %c0_1 = arith.constant 0 : index
    %2 = vector.load %arg1[%c0_0, %c0_1] : memref<8x128xf32, #tpu.memory_space<vmem>>, vector<8x128xf32>
    %c0_2 = arith.constant 0 : index
    %c0_3 = arith.constant 0 : index
    %3 = vector.load %arg2[%c0_2, %c0_3] : memref<128x8xf32, #tpu.memory_space<vmem>>, vector<64x8xf32>
    %c64 = arith.constant 64 : index
    %c0_4 = arith.constant 0 : index
    %4 = vector.load %arg2[%c64, %c0_4] : memref<128x8xf32, #tpu.memory_space<vmem>>, vector<64x8xf32>
    %c0_5 = arith.constant 0 : index
    %c0_6 = arith.constant 0 : index
    %5 = vector.load %arg3[%c0_5, %c0_6] : memref<88x64xf32, #tpu.memory_space<vmem>>, vector<64x64xf32>
    %c64_7 = arith.constant 64 : index
    %c0_8 = arith.constant 0 : index
    %6 = vector.load %arg3[%c64_7, %c0_8] : memref<88x64xf32, #tpu.memory_space<vmem>>, vector<8x64xf32>
    %c72 = arith.constant 72 : index
    %c0_9 = arith.constant 0 : index
    %7 = vector.load %arg3[%c72, %c0_9] : memref<88x64xf32, #tpu.memory_space<vmem>>, vector<8x64xf32>
    %c80 = arith.constant 80 : index
    %c0_10 = arith.constant 0 : index
    %8 = vector.load %arg3[%c80, %c0_10] : memref<88x64xf32, #tpu.memory_space<vmem>>, vector<8x64xf32>
    %9 = vector.extract_strided_slice %8 {offsets = [0, 0], sizes = [1, 64], strides = [1, 1]} : vector<8x64xf32> to vector<1x64xf32>
    %10 = vector.extract_strided_slice %8 {offsets = [1, 0], sizes = [1, 64], strides = [1, 1]} : vector<8x64xf32> to vector<1x64xf32>
    %11 = vector.extract_strided_slice %8 {offsets = [2, 0], sizes = [1, 64], strides = [1, 1]} : vector<8x64xf32> to vector<1x64xf32>
    %12 = tpu.iota {dimensions = array<i32: 0>} : vector<64x8xi32>
    %13 = tpu.iota {dimensions = array<i32: 1>} : vector<64x8xi32>
    %c7_i32 = arith.constant 7 : i32
    %14 = vector.broadcast %c7_i32 : i32 to vector<64x8xi32>
    %15 = arith.andi %12, %14 : vector<64x8xi32>
    %16 = arith.cmpi eq, %15, %13 : vector<64x8xi32>
    %17 = arith.extui %16 : vector<64x8xi1> to vector<64x8xi32>
    %18 = arith.sitofp %17 : vector<64x8xi32> to vector<64x8xf32>
    %19 = arith.mulf %3, %4 : vector<64x8xf32>
    %20 = arith.subf %18, %19 : vector<64x8xf32>
    %cst = arith.constant dense<0.000000e+00> : vector<64x128xf32>
    %21 = tpu.matmul %20, %2, %cst {dimension_numbers = #tpu.dot_dimension_numbers<[1], [0], [0], [1], [0, 0, 1, 1], [], []>} : vector<64x8xf32>, vector<8x128xf32>, vector<64x128xf32> -> vector<64x128xf32>
    %22 = arith.mulf %21, %21 : vector<64x128xf32>
    %23 = vector.shape_cast %22 : vector<64x128xf32> to vector<8x8x128xf32>
    %cst_11 = arith.constant dense<0.000000e+00> : vector<8x8xf32>
    %24 = vector.multi_reduction <add>, %23, %cst_11 [2] : vector<8x8x128xf32> to vector<8x8xf32>
    %cst_12 = arith.constant dense<0.000000e+00> : vector<8xf32>
    %25 = vector.multi_reduction <add>, %24, %cst_12 [1] : vector<8x8xf32> to vector<8xf32>
    %26 = vector.shape_cast %25 : vector<8xf32> to vector<8x1xf32>
    %cst_13 = arith.constant -2.000000e+00 : f32
    %27 = vector.broadcast %cst_13 : f32 to vector<8x1xf32>
    %28 = arith.mulf %27, %26 : vector<8x1xf32>
    %cst_14 = arith.constant 231.210342 : f32
    %29 = vector.broadcast %cst_14 : f32 to vector<8x1xf32>
    %30 = arith.subf %28, %29 : vector<8x1xf32>
    %cst_15 = arith.constant dense<0.000000e+00> : vector<64x64xf32>
    %31 = tpu.matmul %5, %5, %cst_15 {dimension_numbers = #tpu.dot_dimension_numbers<[1], [0], [0], [1], [0, 0, 1, 1], [], []>} : vector<64x64xf32>, vector<64x64xf32>, vector<64x64xf32> -> vector<64x64xf32>
    %cst_16 = arith.constant dense<0.000000e+00> : vector<64x64xf32>
    %32 = tpu.matmul %31, %31, %cst_16 {dimension_numbers = #tpu.dot_dimension_numbers<[1], [0], [0], [1], [0, 0, 1, 1], [], []>} : vector<64x64xf32>, vector<64x64xf32>, vector<64x64xf32> -> vector<64x64xf32>
    %33 = tpu.transpose %32, [1, 0] : vector<64x64xf32> -> vector<64x64xf32>
    %34 = arith.mulf %32, %33 : vector<64x64xf32>
    %35 = vector.shape_cast %34 : vector<64x64xf32> to vector<8x8x64xf32>
    %cst_17 = arith.constant dense<0.000000e+00> : vector<8x8xf32>
    %36 = vector.multi_reduction <add>, %35, %cst_17 [2] : vector<8x8x64xf32> to vector<8x8xf32>
    %cst_18 = arith.constant dense<0.000000e+00> : vector<8xf32>
    %37 = vector.multi_reduction <add>, %36, %cst_18 [1] : vector<8x8xf32> to vector<8xf32>
    %38 = vector.shape_cast %37 : vector<8xf32> to vector<8x1xf32>
    %cst_19 = arith.constant 8.000000e+00 : f32
    %39 = vector.broadcast %cst_19 : f32 to vector<8x1xf32>
    %40 = arith.subf %38, %39 : vector<8x1xf32>
    %41 = math.log %9 : vector<1x64xf32>
    %cst_20 = arith.constant 1.000000e+00 : f32
    %42 = vector.broadcast %cst_20 : f32 to vector<1x64xf32>
    %43 = arith.subf %42, %9 : vector<1x64xf32>
    %44 = math.log %43 : vector<1x64xf32>
    %cst_21 = arith.constant -2.000000e+00 : f32
    %45 = vector.broadcast %cst_21 : f32 to vector<1x64xf32>
    %46 = arith.mulf %45, %11 : vector<1x64xf32>
    %47 = math.exp %46 : vector<1x64xf32>
    %48 = vector.broadcast %10 : vector<1x64xf32> to vector<8x64xf32>
    %49 = arith.subf %7, %48 : vector<8x64xf32>
    %50 = arith.subf %41, %44 : vector<1x64xf32>
    %51 = vector.broadcast %50 : vector<1x64xf32> to vector<8x64xf32>
    %52 = arith.mulf %6, %51 : vector<8x64xf32>
    %53 = arith.mulf %49, %49 : vector<8x64xf32>
    %54 = vector.broadcast %47 : vector<1x64xf32> to vector<8x64xf32>
    %55 = arith.mulf %53, %54 : vector<8x64xf32>
    %56 = arith.mulf %7, %7 : vector<8x64xf32>
    %57 = tpu.concatenate %52, %55, %6, %56, %44, %11 in 0 : vector<8x64xf32>, vector<8x64xf32>, vector<8x64xf32>, vector<8x64xf32>, vector<1x64xf32>, vector<1x64xf32> -> vector<34x64xf32>
    %cst_22 = arith.constant dense<0.000000e+00> : vector<34xf32>
    %58 = vector.multi_reduction <add>, %57, %cst_22 [1] : vector<34x64xf32> to vector<34xf32>
    %59 = vector.shape_cast %58 : vector<34xf32> to vector<34x1xf32>
    %60 = vector.extract_strided_slice %59 {offsets = [0, 0], sizes = [8, 1], strides = [1, 1]} : vector<34x1xf32> to vector<8x1xf32>
    %61 = vector.extract_strided_slice %59 {offsets = [32, 0], sizes = [1, 1], strides = [1, 1]} : vector<34x1xf32> to vector<1x1xf32>
    %62 = vector.broadcast %61 : vector<1x1xf32> to vector<8x1xf32>
    %63 = arith.addf %60, %62 : vector<8x1xf32>
    %64 = vector.extract_strided_slice %59 {offsets = [8, 0], sizes = [8, 1], strides = [1, 1]} : vector<34x1xf32> to vector<8x1xf32>
    %cst_23 = arith.constant -5.000000e-01 : f32
    %65 = vector.broadcast %cst_23 : f32 to vector<8x1xf32>
    %66 = arith.mulf %65, %64 : vector<8x1xf32>
    %67 = vector.extract_strided_slice %59 {offsets = [33, 0], sizes = [1, 1], strides = [1, 1]} : vector<34x1xf32> to vector<1x1xf32>
    %68 = vector.broadcast %67 : vector<1x1xf32> to vector<8x1xf32>
    %69 = arith.subf %66, %68 : vector<8x1xf32>
    %cst_24 = arith.constant 58.8120651 : f32
    %70 = vector.broadcast %cst_24 : f32 to vector<8x1xf32>
    %71 = arith.subf %69, %70 : vector<8x1xf32>
    %72 = vector.extract_strided_slice %59 {offsets = [16, 0], sizes = [8, 1], strides = [1, 1]} : vector<34x1xf32> to vector<8x1xf32>
    %73 = arith.addf %63, %71 : vector<8x1xf32>
    %cst_25 = arith.constant -0.847297847 : f32
    %74 = vector.broadcast %cst_25 : f32 to vector<8x1xf32>
    %75 = arith.mulf %72, %74 : vector<8x1xf32>
    %cst_26 = arith.constant -22.8271961 : f32
    %76 = vector.broadcast %cst_26 : f32 to vector<8x1xf32>
    %77 = arith.addf %75, %76 : vector<8x1xf32>
    %78 = vector.extract_strided_slice %59 {offsets = [24, 0], sizes = [8, 1], strides = [1, 1]} : vector<34x1xf32> to vector<8x1xf32>
    %cst_27 = arith.constant -5.000000e-01 : f32
    %79 = vector.broadcast %cst_27 : f32 to vector<8x1xf32>
    %80 = arith.mulf %79, %78 : vector<8x1xf32>
    %cst_28 = arith.constant 58.8120651 : f32
    %81 = vector.broadcast %cst_28 : f32 to vector<8x1xf32>
    %82 = arith.subf %80, %81 : vector<8x1xf32>
    %83 = arith.addf %77, %82 : vector<8x1xf32>
    %84 = vector.broadcast %0 : f32 to vector<8x1xf32>
    %85 = arith.mulf %84, %40 : vector<8x1xf32>
    %86 = arith.subf %83, %85 : vector<8x1xf32>
    %87 = vector.broadcast %1 : f32 to vector<8x1xf32>
    %88 = arith.mulf %87, %72 : vector<8x1xf32>
    %89 = arith.subf %86, %88 : vector<8x1xf32>
    %90 = arith.subf %73, %89 : vector<8x1xf32>
    %91 = tpu.concatenate %30, %90, %73 in 1 : vector<8x1xf32>, vector<8x1xf32>, vector<8x1xf32> -> vector<8x3xf32>
    %c0_29 = arith.constant 0 : index
    %c0_30 = arith.constant 0 : index
    %92 = vector.load %arg4[%c0_29, %c0_30] : memref<8x3xf32, #tpu.memory_space<vmem>>, vector<8x3xf32>
    tpu.vector_store %arg4[%c0_29, %c0_30], %91 {strides = array<i32>} : memref<8x3xf32, #tpu.memory_space<vmem>>, vector<8x3xf32>,
    return
  }
}

</mosaic_0001>

<bundles_post_ra>
// kernel: vscm_pallas.1
= control target key start
LH: loop header
LB: loop body
LE: loop exit
PB: predicated region body
PF: predicated region fallthrough
CT: control target
= control target key end

     0   :  { %9 = vsyncpa [#allocation3], 0  ;;  %s611_s18 = smov [#allocation2]   ;;  %s826_s0 = inlined_call_operand.vmem [shape: f32[2], index: 0, kind: input, shape index: {}]   ;;  %s827_s1 = inlined_call_operand.vmem [shape: f32[8,128], index: 1, kind: input, shape index: {}]   ;;  %s828_s2 = inlined_call_operand.vmem [shape: f32[128,8], index: 2, kind: input, shape index: {}]   ;;  %s829_s3 = inlined_call_operand.vmem [shape: f32[88,64], index: 3, kind: input, shape index: {}]   ;;  %s830_s4 = inlined_call_operand.vmem [shape: f32[8,3], index: 4, kind: output, shape index: {}]  }
   0x1   :  { %s15_s17 = sshll.u32 %s826_s0, 4  ;;  %s16_s17 = int_to_ptr.vmem [resolvable:$true] %s15_s17 }
   0x2   :  { %18 = dma.vmem_to_smem %s16_s17, 16, %s611_s18, [#allocation3]  }
   0x3   :  { %609 = dma.done.wait [#allocation3], 16  }
   0x4   :  { %610 = vsyncadd [#allocation3], 4294967280 }
   0x5   :  { %29 = sfence }
   0x6   :  { %v56_v0 = vld [vmem:[%s829_s3 + $0x38] sm:$0xff]  ;;  %v55_v1 = vld [vmem:[%s829_s3 + $0x30] sm:$0xff]  ;;  %v54_v2 = vld [vmem:[%s829_s3 + $0x28] sm:$0xff]  ;;  %vm245_vm0 = vcmask 523264   ;;  %v60_v17 = vlaneseq  ;;  %v612_v26 = vmov 0.0   ;;  %vm119_vm2 = vcmask 64512  }
   0x7   :  { %278 = vmatpush.msra.mxu1 %v56_v0  ;;  %573 = vmatpush.msra.mxu3 %v56_v0  ;;  %v53_v3 = vld [vmem:[%s829_s3 + $0x20] sm:$0xff]  ;;  %v52_v4 = vld [vmem:[%s829_s3 + $0x18] sm:$0xff]  ;;  %v51_v5 = vld [vmem:[%s829_s3 + $0x10] sm:$0xff]  ;;  %vm488_vm10 = vcmask 1040384   ;;  %vm502_vm11 = vcmask 517120   ;;  %vm225_vm12 = vcmask 1041409  }
   0x8   :  { %v50_v6 = vld [vmem:[%s829_s3 + $0x8] sm:$0xff]  ;;  %v49_v7 = vld [vmem:[%s829_s3] sm:$0xff]  ;;  %v686_v20 = vshrl.u32 %v60_v17, 7  ;;  %v688_v21 = vand.u32 127, %v60_v17  ;;  %v35_v36 = vld [vmem:[%s828_s2 + $0x10] sm:$0xff]  ;;  %vm227_vm13 = vcmask 1042434  }
   0x9   :  { %279 = vmatpush.msra.mxu1 %v55_v1  ;;  %574 = vmatpush.msra.mxu3 %v55_v1  ;;  %v32_v16 = vld [vmem:[%s827_s1] sm:$0xff]  ;;  %v34_v28 = vld [vmem:[%s828_s2 + $0x8] sm:$0xff]  ;;  %v43_v37 = vld [vmem:[%s828_s2 + $0x50] sm:$0xff]  ;;  %vm229_vm14 = vcmask 1043459   ;;  %vm231_vm15 = vcmask 1044484   ;;  %s536_s18 = sld [smem:[#allocation2 + $0x1]] }
   0xa   :  { %159 = vmatpush.msra.mxu0 %v32_v16  ;;  %v33_v18 = vld [vmem:[%s828_s2] sm:$0xff]  ;;  %v71_v22 = vand.u32 7, %v686_v20  ;;  %v62_v24 = vadd.s32 8, %v686_v20  ;;  %v42_v29 = vld [vmem:[%s828_s2 + $0x48] sm:$0xff]  ;;  %v63_v31 = vadd.s32 16, %v686_v20  ;;  %v105_v38 = vmul.f32 %v43_v37, %v35_v36  ;;  %v36_v43 = vld [vmem:[%s828_s2 + $0x18] sm:$0xff] }
   0xb   :  { %280 = vmatpush.msra.mxu1 %v54_v2  ;;  %575 = vmatpush.msra.mxu3 %v54_v2  ;;  %v41_v19 = vld [vmem:[%s828_s2 + $0x40] sm:$0xff]  ;;  %v104_v32 = vmul.f32 %v42_v29, %v34_v28  ;;  %v64_v41 = vadd.s32 24, %v686_v20  ;;  %v44_v44 = vld [vmem:[%s828_s2 + $0x58] sm:$0xff]  ;;  %v65_v48 = vadd.s32 32, %v686_v20  ;;  %v66_v55 = vadd.s32 40, %v686_v20  ;;  %v38_v57 = vld [vmem:[%s828_s2 + $0x28] sm:$0xff] }
   0xc   :  { %v103_v23 = vmul.f32 %v41_v19, %v33_v18  ;;  %vm79_vm1 = vcmp.eq.s32.totalorder %v71_v22, %v688_v21  ;;  %v72_v25 = vand.u32 7, %v62_v24  ;;  %v73_v34 = vand.u32 7, %v63_v31  ;;  %v37_v50 = vld [vmem:[%s828_s2 + $0x20] sm:$0xff]  ;;  %v46_v58 = vld [vmem:[%s828_s2 + $0x68] sm:$0xff] }
   0xd   :  { %281 = vmatpush.msra.mxu1 %v53_v3  ;;  %576 = vmatpush.msra.mxu3 %v53_v3  ;;  %v537_v27 = vsel %vm79_vm1, 1.0, %v612_v26  ;;  %v74_v42 = vand.u32 7, %v64_v41  ;;  %v106_v45 = vmul.f32 %v44_v44, %v36_v43  ;;  %v75_v49 = vand.u32 7, %v65_v48  ;;  %v45_v51 = vld [vmem:[%s828_s2 + $0x60] sm:$0xff] }
   0xe   :  { %v111_v30 = vsub.f32 %v537_v27, %v103_v23  ;;  %vm80_vm3 = vcmp.eq.s32.totalorder %v72_v25, %v688_v21  ;;  %vm81_vm4 = vcmp.eq.s32.totalorder %v73_v34, %v688_v21  ;;  %v107_v52 = vmul.f32 %v45_v51, %v37_v50 }
   0xf   :  { %282 = vmatpush.msra.mxu1 %v52_v4  ;;  %577 = vmatpush.msra.mxu3 %v52_v4  ;;  %v538_v33 = vsel %vm80_vm3, 1.0, %v612_v26  ;;  %v539_v39 = vsel %vm81_vm4, 1.0, %v612_v26  ;;  %vm82_vm5 = vcmp.eq.s32.totalorder %v74_v42, %v688_v21  ;;  %vm83_vm6 = vcmp.eq.s32.totalorder %v75_v49, %v688_v21 }
  0x10   :  { %545 = vmatmul.msk.f32.vlgmr.msra.gmra.mxu0 %vm119_vm2, %v111_v30  ;;  %v112_v35 = vsub.f32 %v538_v33, %v104_v32  ;;  %v113_v40 = vsub.f32 %v539_v39, %v105_v38  ;;  %v540_v46 = vsel %vm82_vm5, 1.0, %v612_v26  ;;  %v541_v53 = vsel %vm83_vm6, 1.0, %v612_v26 }
  0x11   :  { %283 = vmatpush.msra.mxu1 %v51_v5  ;;  %578 = vmatpush.msra.mxu3 %v51_v5  ;;  %v114_v47 = vsub.f32 %v540_v46, %v106_v45  ;;  %v115_v54 = vsub.f32 %v541_v53, %v107_v52  ;;  %v76_v56 = vand.u32 7, %v66_v55  ;;  %v108_v59 = vmul.f32 %v46_v58, %v38_v57 }
  0x12   :  { %vm233_vm1 = vcmask 1045509   ;;  %vm237_vm3 = vcmask 1047559   ;;  %vm527_vm4 = vcmask 15360   ;;  %vm529_vm5 = vcmask 23552  }
  0x13   :  { %284 = vmatpush.msra.mxu1 %v50_v6  ;;  %579 = vmatpush.msra.mxu3 %v50_v6  ;;  %vm84_vm7 = vcmp.eq.s32.totalorder %v76_v56, %v688_v21 }
  0x14   :  { %v542_v60 = vsel %vm84_vm7, 1.0, %v612_v26 }
  0x15   :  { %285 = vmatpush.msra.mxu1 %v49_v7  ;;  %580 = vmatpush.msra.mxu3 %v49_v7  ;;  %v116_v61 = vsub.f32 %v542_v60, %v108_v59 }
  0x16   :  { %554 = vmatmul.msk.f32.vlgmr.msra.gmra.mxu1 %vm245_vm0, %v49_v7  ;;  %560 = vmatmul.msk.f32.vlgmr.msra.gmra.mxu3 %vm245_vm0, %v55_v1 }
  0x18   :  { %546 = vmatmul.msk.f32.gmra.mxu0 %vm119_vm2, %v112_v35 }
  0x1e   :  { %555 = vmatmul.msk.f32.gmra.mxu1 %vm245_vm0, %v50_v6  ;;  %561 = vmatmul.msk.f32.gmra.mxu3 %vm245_vm0, %v56_v0 }
  0x20   :  { %547 = vmatmul.msk.f32.gmra.mxu0 %vm119_vm2, %v113_v40 }
  0x26   :  { %556 = vmatmul.msk.f32.gmra.mxu1 %vm245_vm0, %v51_v5  ;;  %v68_v5 = vadd.s32 56, %v686_v20 }
  0x28   :  { %548 = vmatmul.msk.f32.gmra.mxu0 %vm119_vm2, %v114_v47 }
  0x2e   :  { %557 = vmatmul.msk.f32.gmra.mxu1 %vm245_vm0, %v52_v4  ;;  %v67_v4 = vadd.s32 48, %v686_v20 }
  0x30   :  { %549 = vmatmul.msk.f32.gmra.mxu0 %vm119_vm2, %v115_v54 }
  0x36   :  { %558 = vmatmul.msk.f32.gmra.mxu1 %vm245_vm0, %v53_v3  ;;  %v47_v3 = vld [vmem:[%s828_s2 + $0x70] sm:$0xff] }
  0x38   :  { %550 = vmatmul.msk.f32.gmra.mxu0 %vm119_vm2, %v116_v61 }
  0x3e   :  { %559 = vmatmul.msk.f32.gmra.mxu1 %vm245_vm0, %v54_v2  ;;  %v39_v2 = vld [vmem:[%s828_s2 + $0x30] sm:$0xff] }
  0x8d   :  { %v161_v6 = vpop.f32.mrf.mxu0 }
  0x8e   :  { %v185_v7 = vmul.f32 %v161_v6, %v161_v6 }
  0x90   :  { %193 = vadd.xlane.f32.xlu1 %v185_v7 }
  0x93   :  { %v287_v8 = vpop.f32.mrf.mxu1 }
  0x95   :  { %v164_v17 = vpop.f32.mrf.mxu0 }
  0x96   :  { %v186_v19 = vmul.f32 %v164_v17, %v164_v17 }
  0x98   :  { %195 = vadd.xlane.f32.xlu1 %v186_v19 }
  0x99   :  { %v305_v9 = vpop.f32.mrf.mxu3 }
  0x9b   :  { %v290_v10 = vpop.f32.mrf.mxu1 }
  0x9d   :  { %v167_v23 = vpop.f32.mrf.mxu0 }
  0x9e   :  { %v187_v24 = vmul.f32 %v167_v23, %v167_v23 }
  0xa0   :  { %197 = vadd.xlane.f32.xlu1 %v187_v24 }
  0xa1   :  { %v308_v11 = vpop.f32.mrf.mxu3 }
  0xa2   :  { %343 = vmatpush.msra.mxu2 %v308_v11  ;;  %581 = vmatpush.msrb.mxu3 %v308_v11 }
  0xa3   :  { %v293_v12 = vpop.f32.mrf.mxu1 }
  0xa4   :  { %344 = vmatpush.msra.mxu2 %v305_v9  ;;  %582 = vmatpush.msrb.mxu3 %v305_v9 }
  0xa5   :  { %v170_v28 = vpop.f32.mrf.mxu0 }
  0xa6   :  { %v188_v29 = vmul.f32 %v170_v28, %v170_v28 }
  0xa8   :  { %199 = vadd.xlane.f32.xlu2 %v188_v29 }
  0xab   :  { %v296_v13 = vpop.f32.mrf.mxu1 }
  0xad   :  { %v173_v30 = vpop.f32.mrf.mxu0 }
  0xae   :  { %v189_v31 = vmul.f32 %v173_v30, %v173_v30 }
  0xb0   :  { %201 = vadd.xlane.f32.xlu1 %v189_v31 }
  0xb3   :  { %v299_v14 = vpop.f32.mrf.mxu1 }
  0xbb   :  { %v302_v15 = vpop.f32.mrf.mxu1 }
  0xbc   :  { %345 = vmatpush.msra.mxu2 %v302_v15  ;;  %583 = vmatpush.msrb.mxu3 %v302_v15 }
  0xbe   :  { %346 = vmatpush.msra.mxu2 %v299_v14  ;;  %584 = vmatpush.msrb.mxu3 %v299_v14 }
  0xc0   :  { %347 = vmatpush.msra.mxu2 %v296_v13  ;;  %585 = vmatpush.msrb.mxu3 %v296_v13 }
  0xc2   :  { %348 = vmatpush.msra.mxu2 %v293_v12  ;;  %586 = vmatpush.msrb.mxu3 %v293_v12 }
  0xc4   :  { %349 = vmatpush.msra.mxu2 %v290_v10  ;;  %587 = vmatpush.msrb.mxu3 %v290_v10 }
  0xc6   :  { %350 = vmatpush.msra.mxu2 %v287_v8  ;;  %588 = vmatpush.msrb.mxu3 %v287_v8 }
  0xc7   :  { %562 = vmatmul.msk.f32.vlgmr.msra.gmra.mxu2 %vm245_vm0, %v287_v8  ;;  %568 = vmatmul.msk.f32.vlgmr.msrb.gmra.mxu3 %vm245_vm0, %v305_v9  ;;  %v77_v8 = vand.u32 7, %v67_v4  ;;  %v109_v9 = vmul.f32 %v47_v3, %v39_v2 }
  0xc9   :  { %vm85_vm8 = vcmp.eq.s32.totalorder %v77_v8, %v688_v21 }
  0xcf   :  { %563 = vmatmul.msk.f32.gmra.mxu2 %vm245_vm0, %v290_v10  ;;  %569 = vmatmul.msk.f32.gmra.mxu3 %vm245_vm0, %v308_v11  ;;  %v78_v10 = vand.u32 7, %v68_v5  ;;  %v543_v11 = vsel %vm85_vm8, 1.0, %v612_v26 }
  0xd1   :  { %vm86_vm9 = vcmp.eq.s32.totalorder %v78_v10, %v688_v21 }
  0xd2   :  { %v544_v18 = vsel %vm86_vm9, 1.0, %v612_v26  ;;  %v176_v26 = vpop.f32.mrf.mxu0 }
  0xd3   :  { %v190_v32 = vmul.f32 %v176_v26, %v176_v26 }
  0xd5   :  { %203 = vadd.xlane.f32.xlu2 %v190_v32 }
  0xd7   :  { %564 = vmatmul.msk.f32.gmra.mxu2 %vm245_vm0, %v293_v12  ;;  %v40_v12 = vld [vmem:[%s828_s2 + $0x38] sm:$0xff] }
  0xdf   :  { %565 = vmatmul.msk.f32.gmra.mxu2 %vm245_vm0, %v296_v13  ;;  %v48_v13 = vld [vmem:[%s828_s2 + $0x78] sm:$0xff] }
  0xe0   :  { %v110_v16 = vmul.f32 %v48_v13, %v40_v12 }
  0xe2   :  { %v118_v20 = vsub.f32 %v544_v18, %v110_v16 }
  0xe7   :  { %566 = vmatmul.msk.f32.gmra.mxu2 %vm245_vm0, %v299_v14  ;;  %v117_v14 = vsub.f32 %v543_v11, %v109_v9 }
  0xe9   :  { %551 = vmatmul.msk.f32.gmra.mxu0 %vm119_vm2, %v117_v14 }
  0xef   :  { %567 = vmatmul.msk.f32.gmra.mxu2 %vm245_vm0, %v302_v15 }
  0xf1   :  { %552 = vmatmul.msk.f32.gmra.mxu0 %vm119_vm2, %v118_v20 }
 0x103   :  { %v194_v61 = vpop.xlane.xlu1 %193 }
 0x10b   :  { %v196_v5 = vpop.xlane.xlu1 %195 }
 0x113   :  { %v198_v18 = vpop.xlane.xlu1 %197 }
 0x11b   :  { %v782_v3 = vpop.xlane.xlu2 %199 }
 0x123   :  { %v202_v26 = vpop.xlane.xlu1 %201 }
 0x14a   :  { %v352_v62 = vpop.f32.mrf.mxu2  ;;  %v370_v25 = vpop.f32.mrf.mxu3 }
 0x14b   :  { %376 = vxpose.xlu0.b32.start [1/8] (short) (narrow) %v352_v62, 64 }
 0x152   :  { %v355_v63 = vpop.f32.mrf.mxu2  ;;  %v373_v27 = vpop.f32.mrf.mxu3 }
 0x153   :  { %377 = vxpose.xlu0.b32.cont [2/8] (short) (narrow) %v355_v63, 64 }
 0x15a   :  { %v358_v0 = vpop.f32.mrf.mxu2 }
 0x15b   :  { %378 = vxpose.xlu0.b32.cont [3/8] (short) (narrow) %v358_v0, 64 }
 0x162   :  { %v361_v1 = vpop.f32.mrf.mxu2 }
 0x163   :  { %379 = vxpose.xlu0.b32.cont [4/8] (short) (narrow) %v361_v1, 64 }
 0x166   :  { %v179_v51 = vpop.f32.mrf.mxu0 }
 0x167   :  { %v191_v53 = vmul.f32 %v179_v51, %v179_v51  ;;  %v220_v51 = vperm.slane %v782_v3, %v688_v21 }
 0x16a   :  { %v364_v15 = vpop.f32.mrf.mxu2 }
 0x16b   :  { %380 = vxpose.xlu0.b32.cont [5/8] (short) (narrow) %v364_v15, 64 }
 0x16e   :  { %v182_v59 = vpop.f32.mrf.mxu0 }
 0x16f   :  { %v192_v60 = vmul.f32 %v182_v59, %v182_v59 }
 0x172   :  { %v367_v22 = vpop.f32.mrf.mxu2 }
 0x173   :  { %381 = vxpose.xlu0.b32.cont [6/8] (short) (narrow) %v367_v22, 64 }
 0x17b   :  { %382 = vxpose.xlu0.b32.cont [7/8] (short) (narrow) %v370_v25, 64 }
 0x183   :  { %383 = vxpose.xlu0.b32.end [8/8] (short) (narrow) %v373_v27, 64 }
 0x1ef   :  { %v392_v33 = vpop.trf.xlu0 }
 0x1f0   :  { %v408_v34 = vmul.f32 %v392_v33, %v352_v62  ;;  %v59_v62 = vld [vmem:[%s829_s3 + $0x50] sm:$0xff] }
 0x1f1   :  { %v476_v2 = vperm.slane %v59_v62, 1  ;;  %v470_v6 = vsub.f32 1.0, %v59_v62  ;;  %v486_v19 = vrot.slane %v59_v62, 1 }
 0x1f2   :  { %v416_v35 = vsel %vm245_vm0, %v408_v34, 0.0 }
 0x1f3   :  { %417 = vadd.xlane.f32.xlu1 %v416_v35 }
 0x1f7   :  { %v393_v36 = vpop.trf.xlu0 }
 0x1f8   :  { %v409_v37 = vmul.f32 %v393_v36, %v355_v63  ;;  %v473_v63 = vmul.f32 -2.0, %v59_v62 }
 0x1fa   :  { %v419_v38 = vsel %vm245_vm0, %v409_v37, 0.0  ;;  %v217_v37 = vperm.slane %v194_v61, %v688_v21 }
 0x1fb   :  { %420 = vadd.xlane.f32.xlu2 %v419_v38  ;;  %v218_v38 = vperm.slane %v196_v5, %v688_v21 }
 0x1ff   :  { %v394_v39 = vpop.trf.xlu0 }
 0x200   :  { %v410_v40 = vmul.f32 %v394_v39, %v358_v0  ;;  %v474_v0 = vmul.f32 1.442695, %v473_v63 }
 0x202   :  { %v422_v41 = vsel %vm245_vm0, %v410_v40, 0.0  ;;  %591 = vpow2.f32 %v474_v0 }
 0x203   :  { %423 = vadd.xlane.f32.xlu2 %v422_v41  ;;  %593 = vlog2.f32 %v470_v6 }
 0x204   :  { %595 = vlog2.f32 %v59_v62 }
 0x207   :  { %v395_v42 = vpop.trf.xlu0 }
 0x208   :  { %v411_v43 = vmul.f32 %v395_v42, %v361_v1  ;;  %v58_v1 = vld [vmem:[%s829_s3 + $0x48] sm:$0xff]  ;;  %v592_v9 = vpop.eup %591 }
 0x209   :  { %v484_v4 = vmul.f32 %v58_v1, %v58_v1  ;;  %v477_v7 = vsub.f32 %v58_v1, %v476_v2  ;;  %v482_v11 = vperm.slane %v592_v9, 2  ;;  %v594_v13 = vpop.eup %593 }
 0x20a   :  { %v425_v44 = vsel %vm245_vm0, %v411_v43, 0.0  ;;  %v596_v14 = vpop.eup %595  ;;  %v472_v17 = vmul.f32 0.6931472, %v594_v13 }
 0x20b   :  { %426 = vadd.xlane.f32.xlu1 %v425_v44  ;;  %v499_v8 = vsel %vm245_vm0, %v484_v4, 0.0  ;;  %v481_v10 = vmul.f32 %v477_v7, %v477_v7  ;;  %v469_v20 = vmul.f32 0.6931472, %v596_v14  ;;  %v219_v44 = vperm.slane %v198_v18, %v688_v21 }
 0x20c   :  { %v489_v23 = vsel %vm488_vm10, %v472_v17, %v486_v19 }
 0x20d   :  { %v483_v12 = vmul.f32 %v482_v11, %v481_v10  ;;  %v478_v24 = vsub.f32 %v469_v20, %v472_v17 }
 0x20f   :  { %v396_v45 = vpop.trf.xlu0  ;;  %v493_v16 = vsel %vm245_vm0, %v483_v12, 0.0  ;;  %v479_v28 = vperm.slane %v478_v24, 0  ;;  %v521_v24 = vstv %s536_s18 }
 0x210   :  { %v412_v46 = vmul.f32 %v396_v45, %v364_v15  ;;  %v785_v15 = vpop.xlane.xlu2 %203 }
 0x211   :  { %v222_v0 = vperm.slane %v785_v15, %v688_v21 }
 0x212   :  { %v428_v47 = vsel %vm245_vm0, %v412_v46, 0.0  ;;  %v226_v46 = vsel %vm225_vm12, %v218_v38, %v217_v37 }
 0x213   :  { %429 = vadd.xlane.f32.xlu2 %v428_v47 }
 0x217   :  { %v397_v48 = vpop.trf.xlu0 }
 0x218   :  { %v413_v49 = vmul.f32 %v397_v48, %v367_v22  ;;  %v57_v22 = vld [vmem:[%s829_s3 + $0x40] sm:$0xff]  ;;  %s30_s3 = sld [smem:[#allocation2]] }
 0x219   :  { %v480_v29 = vmul.f32 %v479_v28, %v57_v22 }
 0x21a   :  { %v431_v50 = vsel %vm245_vm0, %v413_v49, 0.0 }
 0x21b   :  { %432 = vadd.xlane.f32.xlu1 %v431_v50  ;;  %v490_v31 = vsel %vm245_vm0, %v480_v29, 0.0 }
 0x21e   :  { %v518_v19 = vstv %s30_s3 }
 0x21f   :  { %v398_v52 = vpop.trf.xlu0 }
 0x220   :  { %v414_v54 = vmul.f32 %v398_v52, %v370_v25  ;;  %v496_v25 = vsel %vm245_vm0, %v57_v22, 0.0 }
 0x221   :  { %497 = vadd.xlane.f32.xlu0 %v496_v25 }
 0x222   :  { %v434_v55 = vsel %vm245_vm0, %v414_v54, 0.0 }
 0x223   :  { %435 = vadd.xlane.f32.xlu2 %v434_v55  ;;  %205 = vadd.xlane.f32.xlu1 %v191_v53  ;;  %v228_v53 = vsel %vm227_vm13, %v219_v44, %v226_v46 }
 0x227   :  { %v399_v56 = vpop.trf.xlu0 }
 0x228   :  { %v415_v57 = vmul.f32 %v399_v56, %v373_v27  ;;  %v503_v27 = vsel %vm502_vm11, %v489_v23, 0.0 }
 0x22a   :  { %v437_v58 = vsel %vm245_vm0, %v415_v57, 0.0  ;;  %vm235_vm0 = vcmask 1046534  }
 0x22b   :  { %438 = vadd.xlane.f32.xlu2 %v437_v58  ;;  %500 = vadd.xlane.f32.xlu1 %v499_v8  ;;  %v221_v58 = vperm.slane %v202_v26, %v688_v21 }
 0x233   :  { %207 = vadd.xlane.f32.xlu2 %v192_v60  ;;  %494 = vadd.xlane.f32.xlu1 %v493_v16  ;;  %v230_v60 = vsel %vm229_vm14, %v220_v51, %v228_v53 }
 0x234   :  { %v232_v1 = vsel %vm231_vm15, %v221_v58, %v230_v60 }
 0x235   :  { %v234_v4 = vsel %vm233_vm1, %v222_v0, %v232_v1 }
 0x23b   :  { %504 = vadd.xlane.f32.xlu2 %v503_v27  ;;  %491 = vadd.xlane.f32.xlu1 %v490_v31 }
 0x266   :  { %v418_v33 = vpop.xlane.xlu1 %417 }
 0x267   :  { %v448_v42 = vperm.slane %v418_v33, %v688_v21 }
 0x26e   :  { %v421_v30 = vpop.xlane.xlu2 %420 }
 0x26f   :  { %v449_v39 = vperm.slane %v421_v30, %v688_v21 }
 0x271   :  { %v456_v47 = vsel %vm225_vm12, %v449_v39, %v448_v42 }
 0x276   :  { %v424_v32 = vpop.xlane.xlu2 %423 }
 0x277   :  { %v450_v41 = vperm.slane %v424_v32, %v688_v21 }
 0x279   :  { %v457_v49 = vsel %vm227_vm13, %v450_v41, %v456_v47 }
 0x27e   :  { %v427_v35 = vpop.xlane.xlu1 %426 }
 0x27f   :  { %v451_v43 = vperm.slane %v427_v35, %v688_v21 }
 0x281   :  { %v458_v52 = vsel %vm229_vm14, %v451_v43, %v457_v49 }
 0x286   :  { %v430_v34 = vpop.xlane.xlu2 %429 }
 0x287   :  { %v452_v45 = vperm.slane %v430_v34, %v688_v21 }
 0x289   :  { %v459_v54 = vsel %vm231_vm15, %v452_v45, %v458_v52 }
 0x28e   :  { %v433_v40 = vpop.xlane.xlu1 %432 }
 0x28f   :  { %v453_v48 = vperm.slane %v433_v40, %v688_v21 }
 0x291   :  { %v460_v56 = vsel %vm233_vm1, %v453_v48, %v459_v54 }
 0x294   :  { %v498_v11 = vpop.xlane.xlu0 %497 }
 0x295   :  { %v513_v14 = vmul.f32 -0.84729785, %v498_v11  ;;  %v522_v29 = vmul.f32 %v521_v24, %v498_v11 }
 0x296   :  { %v436_v36 = vpop.xlane.xlu2 %435  ;;  %v206_v61 = vpop.xlane.xlu1 %205 }
 0x297   :  { %v454_v50 = vperm.slane %v436_v36, %v688_v21  ;;  %v223_v2 = vperm.slane %v206_v61, %v688_v21  ;;  %v514_v18 = vadd.f32 -22.827196, %v513_v14 }
 0x299   :  { %v461_v59 = vsel %vm235_vm0, %v454_v50, %v460_v56  ;;  %v236_v6 = vsel %vm235_vm0, %v223_v2, %v234_v4 }
 0x29e   :  { %v439_v55 = vpop.xlane.xlu2 %438  ;;  %v501_v9 = vpop.xlane.xlu1 %500 }
 0x29f   :  { %v455_v57 = vperm.slane %v439_v55, %v688_v21  ;;  %v515_v13 = vmul.f32 -0.5, %v501_v9 }
 0x2a1   :  { %v462_v62 = vsel %vm237_vm3, %v455_v57, %v461_v59  ;;  %v572_v17 = vadd.f32 -58.812065, %v515_v13 }
 0x2a2   :  { %v464_v63 = vsel %vm119_vm2, %v462_v62, 0.0 }
 0x2a3   :  { %465 = vadd.xlane.f32.xlu2 %v464_v63  ;;  %v517_v27 = vadd.f32 %v572_v17, %v514_v18 }
 0x2a6   :  { %v208_v3 = vpop.xlane.xlu2 %207  ;;  %v495_v10 = vpop.xlane.xlu1 %494 }
 0x2a7   :  { %v224_v5 = vperm.slane %v208_v3, %v688_v21  ;;  %v508_v15 = vmul.f32 -0.5, %v495_v10 }
 0x2a9   :  { %v238_v7 = vsel %vm237_vm3, %v224_v5, %v236_v6 }
 0x2aa   :  { %v240_v8 = vsel %vm119_vm2, %v238_v7, 0.0  ;;  %vm525_vm2 = vcmask 7168  }
 0x2ab   :  { %241 = vadd.xlane.f32.xlu2 %v240_v8 }
 0x2ae   :  { %v505_v12 = vpop.xlane.xlu2 %504  ;;  %v492_v25 = vpop.xlane.xlu1 %491 }
 0x2af   :  { %v509_v16 = vperm.slane %v505_v12, 1  ;;  %v506_v20 = vperm.slane %v505_v12, 0 }
 0x2b1   :  { %v510_v22 = vsub.f32 %v508_v15, %v509_v16  ;;  %v507_v31 = vadd.f32 %v506_v20, %v492_v25 }
 0x2b3   :  { %v571_v30 = vadd.f32 -58.812065, %v510_v22 }
 0x2b5   :  { %v512_v34 = vadd.f32 %v571_v30, %v507_v31 }
 0x316   :  { %v466_v21 = vpop.xlane.xlu2 %465 }
 0x317   :  { %v570_v23 = vadd.f32 -8.0, %v466_v21 }
 0x319   :  { %v519_v28 = vmul.f32 %v570_v23, %v518_v19 }
 0x31b   :  { %v520_v26 = vsub.f32 %v517_v27, %v519_v28 }
 0x31d   :  { %v523_v32 = vsub.f32 %v520_v26, %v522_v29 }
 0x31e   :  { %v242_v33 = vpop.xlane.xlu2 %241 }
 0x31f   :  { %v243_v35 = vmul.f32 -2.0, %v242_v33  ;;  %v524_v36 = vsub.f32 %v512_v34, %v523_v32 }
 0x321   :  { %v553_v37 = vadd.f32 -231.21034, %v243_v35 }
 0x323   :  { %v526_v38 = vsel %vm525_vm2, %v553_v37, %v524_v36 }
 0x324   :  { %v528_v39 = vsel %vm527_vm4, %v526_v38, %v512_v34 }
 0x325   :  { %530 = vst.msk [vmem:[%s830_s4] sm:$0xff] %vm529_vm5, %v528_v39 }
 0x326   :  { %535 = vsyncpa [#allocation3], 1 }

</bundles_post_ra>
